<compile_context>
chip_gen: v5e
topology: v5e:2x2
jax: 0.10.0
libtpu: 0.0.40
codegen_flags: <defaults>
</compile_context>

<pallas_src>
import jax
import jax.numpy as jnp
from jax.experimental import pallas as pl
from jax.experimental.pallas import tpu as pltpu


def _round_up(a, m):
    return ((a + m - 1) // m) * m


def _seg_sum_kernel(batch_ref, x_ref, sums_ref, cnt_ref):
    """Per-split segment sums via one-hot matmul, accumulated over point chunks.

    Grid = (n_splits, F_pad // tf, chunks_per_split);
    axes: (parallel, parallel, arbitrary/reduction).

    batch_ref: (1, tile_n)   int32  batch ids for this point chunk
    x_ref:     (tile_n, tf)  x.dt   chunk of points / feature block
    sums_ref:  (B, tf)       f32    per-split partial sums (resident over ni)
    cnt_ref:   (B, 1)        f32    per-split partial counts (resident over fi, ni)
    """
    fi = pl.program_id(1)
    ni = pl.program_id(2)
    B = sums_ref.shape[0]
    tn = x_ref.shape[0]

    @pl.when(ni == 0)
    def _():
        sums_ref[...] = jnp.zeros_like(sums_ref)

    @pl.when(jnp.logical_and(ni == 0, fi == 0))
    def _():
        cnt_ref[...] = jnp.zeros_like(cnt_ref)

    ids = batch_ref[...]                                        # (1, tn) lane-aligned
    # inline sublane-axis iota (VPU, ~free) -- no VMEM scratch, no per-step vld
    seg = jax.lax.broadcasted_iota(jnp.int32, (B, tn), 0)       # seg[b, n] = b
    mask = seg == ids                                           # (B, tn); padded ids
                                                                # (== B) match nothing
    onehot = mask.astype(x_ref.dtype)                           # 0/1 exact in bf16/f32

    # segment sums on the MXU with f32 accumulation, straight into the
    # resident output block
    sums_ref[...] += jnp.dot(onehot, x_ref[...],
                             preferred_element_type=jnp.float32)

    # counts only once per point chunk (first feature block)
    @pl.when(fi == 0)
    def _():
        cnt_ref[...] += jnp.sum(mask.astype(jnp.float32), axis=1, keepdims=True)


def _pick_tiles(N, F, B, itemsize, tile_n_req, budget):
    """Choose (tile_n, tf, f_pad) under a VMEM residency budget."""
    f_pad0 = _round_up(F, 128)

    def residency(tn, tf):
        # double-buffered x + batch-id blocks, plus resident output blocks
        return (2 * tn * tf * itemsize            # x tiles
                + 2 * 8 * tn * 4                  # batch-id tiles (sublane padded)
                + B * tf * 4 + B * 128 * 4)       # sums + counts output blocks

    tn = max(128, min(_round_up(int(tile_n_req), 128), _round_up(N, 128)))

    # Prefer a single feature pass: shrink the point tile (not below 1024)
    # before giving up on tf == f_pad0.
    while tn > 1024 and residency(tn, f_pad0) > budget:
        tn = max(1024, _round_up(tn // 2, 128))

    if residency(tn, f_pad0) <= budget:
        return tn, f_pad0, f_pad0

    # If even the narrowest feature tile would not fit (huge B), shrink tn.
    # TODO(synk): tile the segment axis B for very large graph counts.
    while residency(tn, 128) > budget and tn > 128:
        tn = max(128, _round_up(tn // 2, 128))

    # Largest fitting feature tile.
    tf_max = 128
    while tf_max + 128 <= f_pad0 and residency(tn, tf_max + 128) <= budget:
        tf_max += 128

    # Among fitting tiles prefer the largest whose padded-F overhead is small
    # (contiguous DMA rows); otherwise minimize padded-F traffic.
    pad_cap = f_pad0 + max(128, f_pad0 // 8)
    tf = None
    for t in range(tf_max, 127, -128):
        if _round_up(F, t) <= pad_cap:
            tf = t
            break
    if tf is None:
        tf = min(range(128, tf_max + 1, 128), key=lambda t: _round_up(F, t))
    return tn, tf, _round_up(F, tf)


def global_mean_pool(x, batch, num_segments, *, tile_n=2048, n_splits=None,
                     vmem_budget_bytes=24 * 1024 * 1024):
    """Pallas global mean pool.  x: [N, F], batch: [N] int -> [B, F].

    Batch ids outside [0, num_segments) are dropped; empty segments return 0
    (count clamped to 1), matching torch_scatter / torch_geometric semantics.
    """
    N, F = x.shape
    assert batch.shape == (N,)
    B = int(num_segments)
    itemsize = jnp.dtype(x.dtype).itemsize

    tile_n, tf, f_pad = _pick_tiles(N, F, B, itemsize, tile_n, vmem_budget_bytes)

    # split the point range across a leading parallel axis (keeps the second
    # TensorCore busy on v7x even when there is a single feature block)
    n_chunks = (N + tile_n - 1) // tile_n
    if n_splits is None:
        n_splits = 2 if n_chunks >= 4 else 1
    n_splits = max(1, int(n_splits))
    cps = (n_chunks + n_splits - 1) // n_splits          # chunks per split
    n_pad = n_splits * cps * tile_n

    x_p = x
    if n_pad != N or f_pad != F:
        x_p = jnp.pad(x, ((0, n_pad - N), (0, f_pad - F)))
    # padded rows get id = B -> fall out of the one-hot
    batch_p = jnp.pad(batch.astype(jnp.int32), (0, n_pad - N),
                      constant_values=B).reshape(1, n_pad)

    sums, cnts = pl.pallas_call(
        _seg_sum_kernel,
        out_shape=(
            jax.ShapeDtypeStruct((n_splits, B, f_pad), jnp.float32),
            jax.ShapeDtypeStruct((n_splits, B, 1), jnp.float32),
        ),
        grid_spec=pltpu.PrefetchScalarGridSpec(
            num_scalar_prefetch=0,
            grid=(n_splits, f_pad // tf, cps),
            in_specs=[
                # batch ids: blocked per point chunk (lane-aligned (1, tile_n))
                pl.BlockSpec((1, tile_n), lambda si, fi, ni: (0, si * cps + ni)),
                # point / feature tile of x
                pl.BlockSpec((tile_n, tf), lambda si, fi, ni: (si * cps + ni, fi)),
            ],
            out_specs=[
                # per-split partial sums, resident across the reduction axis
                pl.BlockSpec((None, B, tf), lambda si, fi, ni: (si, 0, fi)),
                # per-split counts, resident across both fi and ni
                pl.BlockSpec((None, B, 1), lambda si, fi, ni: (si, 0, 0)),
            ],
        ),
        compiler_params=pltpu.CompilerParams(
            # split & feature axes independent -> parallel; point axis = reduction
            dimension_semantics=("parallel", "parallel", "arbitrary"),
            vmem_limit_bytes=40 * 1024 * 1024,
        ),
    )(batch_p, x_p)

    # tiny trailing combine: merge splits, divide, cast
    total = jnp.sum(sums, axis=0)[:, :F]                  # (B, F) f32
    count = jnp.sum(cnts, axis=0)                         # (B, 1) f32
    return (total / jnp.maximum(count, 1.0)).astype(x.dtype)


class GlobalPool:
    """JAX/Pallas counterpart of the PyTorch GlobalPool module.

    mode 0 (scatter) and mode 1 (python loop over unique ids) are numerically
    identical mean-pools; both map to the same Pallas kernel here.
    """

    def __init__(self, mode=0):
        self.mode = mode

    def __call__(self, x, batch, num_segments):
        if x.shape[0] != batch.shape[0]:
            raise Exception(
                'Error, the batch and the features have not the same size')
        return global_mean_pool(x, batch, num_segments)


if __name__ == "__main__":
    key = jax.random.PRNGKey(0)
    # exercises N padding (1000 -> 1024) and F padding (200 -> 256, single
    # feature pass, lane-dense output).
    N, F, B = 1000, 200, 5
    kx, kb = jax.random.split(key)
    x = jax.random.normal(kx, (N, F), dtype=jnp.float32)
    batch = jnp.sort(jax.random.randint(kb, (N,), 0, B)).astype(jnp.int32)

    pool = GlobalPool(mode=0)
    out = pool(x, batch, B)
    out = jax.block_until_ready(out)

    # pure-JAX reference (torch_geometric.global_mean_pool semantics)
    seg_sum = jax.ops.segment_sum(x, batch, num_segments=B)
    seg_cnt = jax.ops.segment_sum(jnp.ones((N, 1), jnp.float32), batch,
                                  num_segments=B)
    ref = seg_sum / jnp.maximum(seg_cnt, 1.0)

    assert out.shape == (B, F)
    assert jnp.allclose(out, ref, atol=1e-4, rtol=1e-4), (
        float(jnp.max(jnp.abs(out - ref))))
    print("KERNEL_OK")
</pallas_src>

<mosaic_0001>
module attributes {stable_mosaic.version = 11 : i64} {
  func.func @_seg_sum_kernel(%arg0: i32, %arg1: i32, %arg2: i32, %arg3: memref<1x1024xi32, #tpu.memory_space<vmem>>, %arg4: memref<1024x256xf32, #tpu.memory_space<vmem>>, %arg5: memref<1x5x256xf32, #tpu.memory_space<vmem>>, %arg6: memref<1x5x1xf32, #tpu.memory_space<vmem>>) attributes {dimension_semantics = [#tpu.dimension_semantics<parallel>, #tpu.dimension_semantics<parallel>, #tpu.dimension_semantics<arbitrary>], iteration_bounds = array<i64: 1, 1, 1>, scalar_prefetch = 0 : i64, scratch_operands = 0 : i64, tpu.core_type = #tpu.core_type<tc>, window_params = [{transform_indices = @transform_0, window_bounds = array<i64: 1, 1024>}, {transform_indices = @transform_1, window_bounds = array<i64: 1024, 256>}, {transform_indices = @transform_2, window_bounds = array<i64: 1, 5, 256>}, {transform_indices = @transform_3, window_bounds = array<i64: 1, 5, 1>}]} {
    %c0_i32 = arith.constant 0 : i32
    %0 = arith.cmpi eq, %arg2, %c0_i32 : i32
    %1 = arith.extui %0 : i1 to i32
    %c0_i32_0 = arith.constant 0 : i32
    %2 = arith.cmpi ne, %1, %c0_i32_0 : i32
    scf.if %2 {
      %cst_15 = arith.constant 0.000000e+00 : f32
      %25 = vector.broadcast %cst_15 : f32 to vector<5x256xf32>
      %c0_16 = arith.constant 0 : index
      %c0_17 = arith.constant 0 : index
      %c0_18 = arith.constant 0 : index
      %26 = vector.load %arg5[%c0_16, %c0_17, %c0_18] : memref<1x5x256xf32, #tpu.memory_space<vmem>>, vector<1x5x256xf32>
      %27 = vector.shape_cast %26 : vector<1x5x256xf32> to vector<5x256xf32>
      %28 = vector.shape_cast %25 : vector<5x256xf32> to vector<1x5x256xf32>
      tpu.vector_store %arg5[%c0_16, %c0_17, %c0_18], %28 {strides = array<i32>} : memref<1x5x256xf32, #tpu.memory_space<vmem>>, vector<1x5x256xf32>,
    } else {
    }
    %c0_i32_1 = arith.constant 0 : i32
    %3 = arith.cmpi eq, %arg2, %c0_i32_1 : i32
    %c0_i32_2 = arith.constant 0 : i32
    %4 = arith.cmpi eq, %arg1, %c0_i32_2 : i32
    %5 = arith.andi %3, %4 : i1
    %6 = arith.extui %5 : i1 to i32
    %c0_i32_3 = arith.constant 0 : i32
    %7 = arith.cmpi ne, %6, %c0_i32_3 : i32
    scf.if %7 {
      %cst_15 = arith.constant 0.000000e+00 : f32
      %25 = vector.broadcast %cst_15 : f32 to vector<5x1xf32>
      %c0_16 = arith.constant 0 : index
      %c0_17 = arith.constant 0 : index
      %c0_18 = arith.constant 0 : index
      %26 = vector.load %arg6[%c0_16, %c0_17, %c0_18] : memref<1x5x1xf32, #tpu.memory_space<vmem>>, vector<1x5x1xf32>
      %27 = vector.shape_cast %26 : vector<1x5x1xf32> to vector<5x1xf32>
      %28 = vector.shape_cast %25 : vector<5x1xf32> to vector<1x5x1xf32>
      tpu.vector_store %arg6[%c0_16, %c0_17, %c0_18], %28 {strides = array<i32>} : memref<1x5x1xf32, #tpu.memory_space<vmem>>, vector<1x5x1xf32>,
    } else {
    }
    %c0 = arith.constant 0 : index
    %c0_4 = arith.constant 0 : index
    %8 = vector.load %arg3[%c0, %c0_4] : memref<1x1024xi32, #tpu.memory_space<vmem>>, vector<1x1024xi32>
    %9 = tpu.iota {dimensions = array<i32: 0>} : vector<5x1024xi32>
    %10 = vector.broadcast %8 : vector<1x1024xi32> to vector<5x1024xi32>
    %11 = arith.cmpi eq, %9, %10 : vector<5x1024xi32>
    %12 = arith.extui %11 : vector<5x1024xi1> to vector<5x1024xi32>
    %13 = arith.sitofp %12 : vector<5x1024xi32> to vector<5x1024xf32>
    %c0_5 = arith.constant 0 : index
    %c0_6 = arith.constant 0 : index
    %c0_7 = arith.constant 0 : index
    %14 = vector.load %arg5[%c0_5, %c0_6, %c0_7] : memref<1x5x256xf32, #tpu.memory_space<vmem>>, vector<1x5x256xf32>
    %15 = vector.shape_cast %14 : vector<1x5x256xf32> to vector<5x256xf32>
    %c0_8 = arith.constant 0 : index
    %c0_9 = arith.constant 0 : index
    %16 = vector.load %arg4[%c0_8, %c0_9] : memref<1024x256xf32, #tpu.memory_space<vmem>>, vector<1024x256xf32>
    %cst = arith.constant dense<0.000000e+00> : vector<5x256xf32>
    %17 = tpu.matmul %13, %16, %cst {dimension_numbers = #tpu.dot_dimension_numbers<[1], [0], [0], [1], [0, 0, 1, 1], [], []>} : vector<5x1024xf32>, vector<1024x256xf32>, vector<5x256xf32> -> vector<5x256xf32>
    %18 = arith.addf %15, %17 : vector<5x256xf32>
    %c0_10 = arith.constant 0 : index
    %c0_11 = arith.constant 0 : index
    %c0_12 = arith.constant 0 : index
    %19 = vector.load %arg5[%c0_10, %c0_11, %c0_12] : memref<1x5x256xf32, #tpu.memory_space<vmem>>, vector<1x5x256xf32>
    %20 = vector.shape_cast %19 : vector<1x5x256xf32> to vector<5x256xf32>
    %21 = vector.shape_cast %18 : vector<5x256xf32> to vector<1x5x256xf32>
    tpu.vector_store %arg5[%c0_10, %c0_11, %c0_12], %21 {strides = array<i32>} : memref<1x5x256xf32, #tpu.memory_space<vmem>>, vector<1x5x256xf32>,
    %c0_i32_13 = arith.constant 0 : i32
    %22 = arith.cmpi eq, %arg1, %c0_i32_13 : i32
    %23 = arith.extui %22 : i1 to i32
    %c0_i32_14 = arith.constant 0 : i32
    %24 = arith.cmpi ne, %23, %c0_i32_14 : i32
    scf.if %24 {
      %c0_15 = arith.constant 0 : index
      %c0_16 = arith.constant 0 : index
      %c0_17 = arith.constant 0 : index
      %25 = vector.load %arg6[%c0_15, %c0_16, %c0_17] : memref<1x5x1xf32, #tpu.memory_space<vmem>>, vector<1x5x1xf32>
      %26 = vector.shape_cast %25 : vector<1x5x1xf32> to vector<5x1xf32>
      %27 = arith.extui %11 : vector<5x1024xi1> to vector<5x1024xi32>
      %28 = arith.sitofp %27 : vector<5x1024xi32> to vector<5x1024xf32>
      %cst_18 = arith.constant dense<0.000000e+00> : vector<5xf32>
      %29 = vector.multi_reduction <add>, %28, %cst_18 [1] : vector<5x1024xf32> to vector<5xf32>
      %30 = vector.shape_cast %29 : vector<5xf32> to vector<5x1xf32>
      %31 = arith.addf %26, %30 : vector<5x1xf32>
      %c0_19 = arith.constant 0 : index
      %c0_20 = arith.constant 0 : index
      %c0_21 = arith.constant 0 : index
      %32 = vector.load %arg6[%c0_19, %c0_20, %c0_21] : memref<1x5x1xf32, #tpu.memory_space<vmem>>, vector<1x5x1xf32>
      %33 = vector.shape_cast %32 : vector<1x5x1xf32> to vector<5x1xf32>
      %34 = vector.shape_cast %31 : vector<5x1xf32> to vector<1x5x1xf32>
      tpu.vector_store %arg6[%c0_19, %c0_20, %c0_21], %34 {strides = array<i32>} : memref<1x5x1xf32, #tpu.memory_space<vmem>>, vector<1x5x1xf32>,
    } else {
    }
    return
  }
  func.func @transform_0(%arg0: i32, %arg1: i32, %arg2: i32) -> (i32, i32) {
    %c1_i32 = arith.constant 1 : i32
    %0 = arith.muli %arg0, %c1_i32 : i32
    %1 = arith.addi %0, %arg2 : i32
    %c0_i32 = arith.constant 0 : i32
    %c0_i32_0 = arith.constant 0 : i32
    return %c0_i32, %1 : i32, i32
  }
  func.func @transform_1(%arg0: i32, %arg1: i32, %arg2: i32) -> (i32, i32) {
    %c1_i32 = arith.constant 1 : i32
    %0 = arith.muli %arg0, %c1_i32 : i32
    %1 = arith.addi %0, %arg2 : i32
    %c0_i32 = arith.constant 0 : i32
    return %1, %arg1 : i32, i32
  }
  func.func @transform_2(%arg0: i32, %arg1: i32, %arg2: i32) -> (i32, i32, i32) {
    %c0_i32 = arith.constant 0 : i32
    %c0_i32_0 = arith.constant 0 : i32
    return %arg0, %c0_i32, %arg1 : i32, i32, i32
  }
  func.func @transform_3(%arg0: i32, %arg1: i32, %arg2: i32) -> (i32, i32, i32) {
    %c0_i32 = arith.constant 0 : i32
    %c0_i32_0 = arith.constant 0 : i32
    %c0_i32_1 = arith.constant 0 : i32
    return %arg0, %c0_i32, %c0_i32_0 : i32, i32, i32
  }
}

</mosaic_0001>

<bundles_post_ra>
// kernel: tpu_custom_call.1
= control target key start
LH: loop header
LB: loop body
LE: loop exit
PB: predicated region body
PF: predicated region fallthrough
CT: control target
= control target key end

     0   :  { %9 = vsyncpa [#allocation3], 0  ;;  %s996_s0 = inlined_call_operand.hbm [shape: s32[1,1024], index: 0, kind: input, shape index: {}]   ;;  %s997_s1 = inlined_call_operand.hbm [shape: f32[1024,256], index: 1, kind: input, shape index: {}]   ;;  %s998_s2 = inlined_call_operand.vmem [shape: f32[1,5,256], index: 2, kind: output, shape index: {0}]   ;;  %s999_s3 = inlined_call_operand.vmem [shape: f32[1,5,1], index: 3, kind: output, shape index: {1}]  }
   0x1   :  { %s19_s14 = sshll.u32 %s996_s0, 4  ;;  %s20_s14 = int_to_ptr.hbm [resolvable:$true] %s19_s14 }
   0x2   :  { %10 = vsyncpa [#allocation5], 0  ;;  %s802_s15 = smov [#allocation2]   ;;  %s34_s19 = sshll.u32 %s997_s1, 4  ;;  %s35_s19 = int_to_ptr.hbm [resolvable:$true] %s34_s19 }
   0x3   :  { %s21_s16 = sshll.u32 %s802_s15, 4  ;;  %s803_s20 = smov [#allocation4]   ;;  %s22_s16 = int_to_ptr.vmem [resolvable:$true] %s21_s16 }
   0x4   :  { %24 = dma.hbm_to_vmem [thread:$0]  %s20_s14, 128, %s22_s16, [#allocation3]  }
   0x5   :  { %s36_s21 = sshll.u32 %s803_s20, 4  ;;  %s804_s22 = smov 256   ;;  %s37_s21 = int_to_ptr.vmem [resolvable:$true] %s36_s21 }
   0x6   :  { %s805_s23 = smov 16  }
   0x7   :  { %42 = dma.hbm_to_vmem [thread:$0]  %s35_s19, 32768, %s37_s21, [#allocation5], %s804_s22, %s804_s22, %s805_s23  }
   0x8   :  { %798 = dma.done.wait [#allocation3], 128  }
   0x9   :  { %799 = vsyncadd [#allocation3], 4294967168 }
   0xa   :  { %800 = dma.done.wait [#allocation5], 32768  }
   0xb   :  { %801 = vsyncadd [#allocation5], 4294934528  ;;  %v135_v0 = vld [vmem:[#allocation4 + $0xf0] sm:$0xff]  ;;  %v133_v2 = vld [vmem:[#allocation4 + $0xe0] sm:$0xff]  ;;  %vm689_vm8 = vcmask 1044480   ;;  %vm66_vm9 = vcmask 4096  }
   0xc   :  { %v199_v1 = vld [vmem:[#allocation4 + $0x2f0] sm:$0xff]  ;;  %361 = vmatpush.msra.mxu0 %v135_v0  ;;  %v197_v4 = vld [vmem:[#allocation4 + $0x2e0] sm:$0xff] }
   0xd   :  { %401 = vmatpush.msra.mxu2 %v199_v1  ;;  %v167_v3 = vld [vmem:[#allocation4 + $0x1f0] sm:$0xff]  ;;  %v165_v7 = vld [vmem:[#allocation4 + $0x1e0] sm:$0xff] }
   0xe   :  { %v231_v5 = vld [vmem:[#allocation4 + $0x3f0] sm:$0xff]  ;;  %381 = vmatpush.msra.mxu1 %v167_v3  ;;  %362 = vmatpush.msra.mxu0 %v133_v2  ;;  %v229_v9 = vld [vmem:[#allocation4 + $0x3e0] sm:$0xff]  ;;  %v806_v2 = vmov 0.0  }
   0xf   :  { %421 = vmatpush.msra.mxu3 %v231_v5  ;;  %v131_v6 = vld [vmem:[#allocation4 + $0xd0] sm:$0xff]  ;;  %402 = vmatpush.msra.mxu2 %v197_v4  ;;  %v129_v11 = vld [vmem:[#allocation4 + $0xc0] sm:$0xff]  ;;  %59 = vst [vmem:[%s998_s2] sm:$0x1f] %v806_v2 }
  0x10   :  { %v195_v8 = vld [vmem:[#allocation4 + $0x2d0] sm:$0xff]  ;;  %382 = vmatpush.msra.mxu1 %v165_v7  ;;  %v193_v12 = vld [vmem:[#allocation4 + $0x2c0] sm:$0xff]  ;;  %363 = vmatpush.msra.mxu0 %v131_v6  ;;  %60 = vst [vmem:[%s998_s2 + $0x8] sm:$0x1f] %v806_v2 }
  0x11   :  { %v163_v10 = vld [vmem:[#allocation4 + $0x1d0] sm:$0xff]  ;;  %422 = vmatpush.msra.mxu3 %v229_v9  ;;  %403 = vmatpush.msra.mxu2 %v195_v8  ;;  %v161_v14 = vld [vmem:[#allocation4 + $0x1c0] sm:$0xff]  ;;  %67 = vst.msk [vmem:[%s999_s3] sm:$0x1f] %vm66_vm9, %v806_v2 }
  0x12   :  { %v227_v13 = vld [vmem:[#allocation4 + $0x3d0] sm:$0xff]  ;;  %v225_v15 = vld [vmem:[#allocation4 + $0x3c0] sm:$0xff]  ;;  %383 = vmatpush.msra.mxu1 %v163_v10  ;;  %364 = vmatpush.msra.mxu0 %v129_v11 }
  0x13   :  { %423 = vmatpush.msra.mxu3 %v227_v13  ;;  %v127_v16 = vld [vmem:[#allocation4 + $0xb0] sm:$0xff]  ;;  %404 = vmatpush.msra.mxu2 %v193_v12  ;;  %v125_v20 = vld [vmem:[#allocation4 + $0xa0] sm:$0xff] }
  0x14   :  { %v191_v17 = vld [vmem:[#allocation4 + $0x2b0] sm:$0xff]  ;;  %384 = vmatpush.msra.mxu1 %v161_v14  ;;  %v189_v21 = vld [vmem:[#allocation4 + $0x2a0] sm:$0xff]  ;;  %365 = vmatpush.msra.mxu0 %v127_v16 }
  0x15   :  { %v159_v18 = vld [vmem:[#allocation4 + $0x1b0] sm:$0xff]  ;;  %424 = vmatpush.msra.mxu3 %v225_v15  ;;  %405 = vmatpush.msra.mxu2 %v191_v17  ;;  %v157_v22 = vld [vmem:[#allocation4 + $0x1a0] sm:$0xff] }
  0x16   :  { %v223_v19 = vld [vmem:[#allocation4 + $0x3b0] sm:$0xff]  ;;  %v221_v23 = vld [vmem:[#allocation4 + $0x3a0] sm:$0xff]  ;;  %385 = vmatpush.msra.mxu1 %v159_v18  ;;  %366 = vmatpush.msra.mxu0 %v125_v20 }
  0x17   :  { %425 = vmatpush.msra.mxu3 %v223_v19  ;;  %v123_v24 = vld [vmem:[#allocation4 + $0x90] sm:$0xff]  ;;  %406 = vmatpush.msra.mxu2 %v189_v21  ;;  %v121_v28 = vld [vmem:[#allocation4 + $0x80] sm:$0xff] }
  0x18   :  { %v187_v25 = vld [vmem:[#allocation4 + $0x290] sm:$0xff]  ;;  %386 = vmatpush.msra.mxu1 %v157_v22  ;;  %v185_v29 = vld [vmem:[#allocation4 + $0x280] sm:$0xff]  ;;  %367 = vmatpush.msra.mxu0 %v123_v24 }
  0x19   :  { %v155_v26 = vld [vmem:[#allocation4 + $0x190] sm:$0xff]  ;;  %426 = vmatpush.msra.mxu3 %v221_v23  ;;  %407 = vmatpush.msra.mxu2 %v187_v25  ;;  %v153_v30 = vld [vmem:[#allocation4 + $0x180] sm:$0xff] }
  0x1a   :  { %v219_v27 = vld [vmem:[#allocation4 + $0x390] sm:$0xff]  ;;  %v217_v31 = vld [vmem:[#allocation4 + $0x380] sm:$0xff]  ;;  %387 = vmatpush.msra.mxu1 %v155_v26  ;;  %368 = vmatpush.msra.mxu0 %v121_v28 }
  0x1b   :  { %427 = vmatpush.msra.mxu3 %v219_v27  ;;  %v119_v32 = vld [vmem:[#allocation4 + $0x70] sm:$0xff]  ;;  %408 = vmatpush.msra.mxu2 %v185_v29  ;;  %v117_v36 = vld [vmem:[#allocation4 + $0x60] sm:$0xff] }
  0x1c   :  { %v183_v33 = vld [vmem:[#allocation4 + $0x270] sm:$0xff]  ;;  %388 = vmatpush.msra.mxu1 %v153_v30  ;;  %v181_v37 = vld [vmem:[#allocation4 + $0x260] sm:$0xff]  ;;  %369 = vmatpush.msra.mxu0 %v119_v32 }
  0x1d   :  { %v151_v34 = vld [vmem:[#allocation4 + $0x170] sm:$0xff]  ;;  %428 = vmatpush.msra.mxu3 %v217_v31  ;;  %409 = vmatpush.msra.mxu2 %v183_v33  ;;  %v149_v38 = vld [vmem:[#allocation4 + $0x160] sm:$0xff] }
  0x1e   :  { %v215_v35 = vld [vmem:[#allocation4 + $0x370] sm:$0xff]  ;;  %v213_v39 = vld [vmem:[#allocation4 + $0x360] sm:$0xff]  ;;  %389 = vmatpush.msra.mxu1 %v151_v34  ;;  %370 = vmatpush.msra.mxu0 %v117_v36 }
  0x1f   :  { %429 = vmatpush.msra.mxu3 %v215_v35  ;;  %v115_v40 = vld [vmem:[#allocation4 + $0x50] sm:$0xff]  ;;  %410 = vmatpush.msra.mxu2 %v181_v37  ;;  %v113_v44 = vld [vmem:[#allocation4 + $0x40] sm:$0xff] }
  0x20   :  { %v179_v41 = vld [vmem:[#allocation4 + $0x250] sm:$0xff]  ;;  %390 = vmatpush.msra.mxu1 %v149_v38  ;;  %v177_v45 = vld [vmem:[#allocation4 + $0x240] sm:$0xff]  ;;  %371 = vmatpush.msra.mxu0 %v115_v40 }
  0x21   :  { %v147_v42 = vld [vmem:[#allocation4 + $0x150] sm:$0xff]  ;;  %430 = vmatpush.msra.mxu3 %v213_v39  ;;  %411 = vmatpush.msra.mxu2 %v179_v41  ;;  %v145_v46 = vld [vmem:[#allocation4 + $0x140] sm:$0xff] }
  0x22   :  { %v211_v43 = vld [vmem:[#allocation4 + $0x350] sm:$0xff]  ;;  %v209_v47 = vld [vmem:[#allocation4 + $0x340] sm:$0xff]  ;;  %391 = vmatpush.msra.mxu1 %v147_v42  ;;  %372 = vmatpush.msra.mxu0 %v113_v44 }
  0x23   :  { %431 = vmatpush.msra.mxu3 %v211_v43  ;;  %v111_v48 = vld [vmem:[#allocation4 + $0x30] sm:$0xff]  ;;  %412 = vmatpush.msra.mxu2 %v177_v45  ;;  %v109_v52 = vld [vmem:[#allocation4 + $0x20] sm:$0xff]  ;;  %v69_v45 = vlaneseq }
  0x24   :  { %v175_v49 = vld [vmem:[#allocation4 + $0x230] sm:$0xff]  ;;  %392 = vmatpush.msra.mxu1 %v145_v46  ;;  %v173_v53 = vld [vmem:[#allocation4 + $0x220] sm:$0xff]  ;;  %373 = vmatpush.msra.mxu0 %v111_v48  ;;  %v842_v48 = vld [vmem:[#allocation2] sm:$0xff] }
  0x25   :  { %v143_v50 = vld [vmem:[#allocation4 + $0x130] sm:$0xff]  ;;  %432 = vmatpush.msra.mxu3 %v209_v47  ;;  %413 = vmatpush.msra.mxu2 %v175_v49  ;;  %v141_v54 = vld [vmem:[#allocation4 + $0x120] sm:$0xff] }
  0x26   :  { %v207_v51 = vld [vmem:[#allocation4 + $0x330] sm:$0xff]  ;;  %v205_v55 = vld [vmem:[#allocation4 + $0x320] sm:$0xff]  ;;  %393 = vmatpush.msra.mxu1 %v143_v50  ;;  %374 = vmatpush.msra.mxu0 %v109_v52 }
  0x27   :  { %433 = vmatpush.msra.mxu3 %v207_v51  ;;  %v107_v56 = vld [vmem:[#allocation4 + $0x10] sm:$0xff]  ;;  %414 = vmatpush.msra.mxu2 %v173_v53  ;;  %v105_v60 = vld [vmem:[#allocation4] sm:$0xff] }
  0x28   :  { %v171_v57 = vld [vmem:[#allocation4 + $0x210] sm:$0xff]  ;;  %394 = vmatpush.msra.mxu1 %v141_v54  ;;  %v169_v61 = vld [vmem:[#allocation4 + $0x200] sm:$0xff]  ;;  %375 = vmatpush.msra.mxu0 %v107_v56  ;;  %v73_v56 = vperm.slane %v842_v48, 2 }
  0x29   :  { %v139_v58 = vld [vmem:[#allocation4 + $0x110] sm:$0xff]  ;;  %434 = vmatpush.msra.mxu3 %v205_v55  ;;  %415 = vmatpush.msra.mxu2 %v171_v57  ;;  %v137_v0 = vld [vmem:[#allocation4 + $0x100] sm:$0xff]  ;;  %v844_v55 = vshrl.u32 %v69_v45, 7  ;;  %v158_v45 = vld [vmem:[#allocation4 + $0x1a8] sm:$0xff] }
  0x2a   :  { %v203_v59 = vld [vmem:[#allocation4 + $0x310] sm:$0xff]  ;;  %395 = vmatpush.msra.mxu1 %v139_v58  ;;  %v201_v1 = vld [vmem:[#allocation4 + $0x300] sm:$0xff]  ;;  %376 = vmatpush.msra.mxu0 %v105_v60 }
  0x2b   :  { %v263_v62 = vld [vmem:[#allocation4 + $0x4f0] sm:$0xff]  ;;  %435 = vmatpush.msra.mxu3 %v203_v59  ;;  %416 = vmatpush.msra.mxu2 %v169_v61  ;;  %v261_v3 = vld [vmem:[#allocation4 + $0x4e0] sm:$0xff]  ;;  %v71_v61 = vperm.slane %v842_v48, 0  ;;  %vm850_vm0 = vcmp.eq.s32.totalorder %v844_v55, %v73_v56  ;;  %v118_v56 = vld [vmem:[#allocation4 + $0x68] sm:$0xff] }
  0x2c   :  { %v327_v63 = vld [vmem:[#allocation4 + $0x6f0] sm:$0xff]  ;;  %441 = vmatpush.msrb.mxu0 %v263_v62  ;;  %v325_v5 = vld [vmem:[#allocation4 + $0x6e0] sm:$0xff]  ;;  %396 = vmatpush.msra.mxu1 %v137_v0  ;;  %v74_v0 = vperm.slane %v842_v48, 3 }
  0x2d   :  { %v295_v4 = vld [vmem:[#allocation4 + $0x5f0] sm:$0xff]  ;;  %481 = vmatpush.msrb.mxu2 %v327_v63  ;;  %436 = vmatpush.msra.mxu3 %v201_v1  ;;  %v293_v8 = vld [vmem:[#allocation4 + $0x5e0] sm:$0xff]  ;;  %vm856_vm1 = vcmp.eq.s32.totalorder %v844_v55, %v71_v61  ;;  %v150_v61 = vld [vmem:[#allocation4 + $0x168] sm:$0xff] }
  0x2e   :  { %v359_v6 = vld [vmem:[#allocation4 + $0x7f0] sm:$0xff]  ;;  %442 = vmatpush.msrb.mxu0 %v261_v3  ;;  %461 = vmatpush.msrb.mxu1 %v295_v4  ;;  %v357_v10 = vld [vmem:[#allocation4 + $0x7e0] sm:$0xff]  ;;  %vm864_vm2 = vcmp.eq.s32.totalorder %v844_v55, %v74_v0  ;;  %v114_v0 = vld [vmem:[#allocation4 + $0x48] sm:$0xff] }
  0x2f   :  { %v259_v7 = vld [vmem:[#allocation4 + $0x4d0] sm:$0xff]  ;;  %482 = vmatpush.msrb.mxu2 %v325_v5  ;;  %501 = vmatpush.msrb.mxu3 %v359_v6  ;;  %v257_v11 = vld [vmem:[#allocation4 + $0x4c0] sm:$0xff]  ;;  %v72_v6 = vperm.slane %v842_v48, 1  ;;  %v238_v1 = vld [vmem:[#allocation4 + $0x428] sm:$0xff] }
  0x30   :  { %v323_v9 = vld [vmem:[#allocation4 + $0x6d0] sm:$0xff]  ;;  %443 = vmatpush.msrb.mxu0 %v259_v7  ;;  %462 = vmatpush.msrb.mxu1 %v293_v8  ;;  %v321_v13 = vld [vmem:[#allocation4 + $0x6c0] sm:$0xff]  ;;  %v236_v8 = vld [vmem:[#allocation4 + $0x418] sm:$0xff] }
  0x31   :  { %v291_v12 = vld [vmem:[#allocation4 + $0x5d0] sm:$0xff]  ;;  %483 = vmatpush.msrb.mxu2 %v323_v9  ;;  %502 = vmatpush.msrb.mxu3 %v357_v10  ;;  %v289_v16 = vld [vmem:[#allocation4 + $0x5c0] sm:$0xff]  ;;  %v807_v9 = vmov 1.0   ;;  %vm872_vm3 = vcmp.eq.s32.totalorder %v844_v55, %v72_v6  ;;  %v112_v6 = vld [vmem:[#allocation4 + $0x38] sm:$0xff] }
  0x32   :  { %v355_v14 = vld [vmem:[#allocation4 + $0x7d0] sm:$0xff]  ;;  %444 = vmatpush.msrb.mxu0 %v257_v11  ;;  %463 = vmatpush.msrb.mxu1 %v291_v12  ;;  %v353_v18 = vld [vmem:[#allocation4 + $0x7c0] sm:$0xff]  ;;  %v136_v11 = vld [vmem:[#allocation4 + $0xf8] sm:$0xff] }
  0x33   :  { %v255_v15 = vld [vmem:[#allocation4 + $0x4b0] sm:$0xff]  ;;  %484 = vmatpush.msrb.mxu2 %v321_v13  ;;  %503 = vmatpush.msrb.mxu3 %v355_v14  ;;  %v253_v19 = vld [vmem:[#allocation4 + $0x4a0] sm:$0xff]  ;;  %v200_v12 = vld [vmem:[#allocation4 + $0x2f8] sm:$0xff] }
  0x34   :  { %v319_v17 = vld [vmem:[#allocation4 + $0x6b0] sm:$0xff]  ;;  %445 = vmatpush.msrb.mxu0 %v255_v15  ;;  %464 = vmatpush.msrb.mxu1 %v289_v16  ;;  %v317_v21 = vld [vmem:[#allocation4 + $0x6a0] sm:$0xff]  ;;  %v134_v16 = vld [vmem:[#allocation4 + $0xe8] sm:$0xff] }
  0x35   :  { %v287_v20 = vld [vmem:[#allocation4 + $0x5b0] sm:$0xff]  ;;  %485 = vmatpush.msrb.mxu2 %v319_v17  ;;  %504 = vmatpush.msrb.mxu3 %v353_v18  ;;  %v285_v24 = vld [vmem:[#allocation4 + $0x5a0] sm:$0xff]  ;;  %v168_v17 = vld [vmem:[#allocation4 + $0x1f8] sm:$0xff]  ;;  %v77_v18 = vperm.slane %v842_v48, 6 }
  0x36   :  { %v351_v22 = vld [vmem:[#allocation4 + $0x7b0] sm:$0xff]  ;;  %446 = vmatpush.msrb.mxu0 %v253_v19  ;;  %465 = vmatpush.msrb.mxu1 %v287_v20  ;;  %v349_v26 = vld [vmem:[#allocation4 + $0x7a0] sm:$0xff]  ;;  %v198_v19 = vld [vmem:[#allocation4 + $0x2e8] sm:$0xff] }
  0x37   :  { %v251_v23 = vld [vmem:[#allocation4 + $0x490] sm:$0xff]  ;;  %486 = vmatpush.msrb.mxu2 %v317_v21  ;;  %505 = vmatpush.msrb.mxu3 %v351_v22  ;;  %v249_v27 = vld [vmem:[#allocation4 + $0x480] sm:$0xff]  ;;  %v232_v20 = vld [vmem:[#allocation4 + $0x3f8] sm:$0xff]  ;;  %vm886_vm4 = vcmp.eq.s32.totalorder %v844_v55, %v77_v18 }
  0x38   :  { %v315_v25 = vld [vmem:[#allocation4 + $0x690] sm:$0xff]  ;;  %447 = vmatpush.msrb.mxu0 %v251_v23  ;;  %466 = vmatpush.msrb.mxu1 %v285_v24  ;;  %v313_v29 = vld [vmem:[#allocation4 + $0x680] sm:$0xff]  ;;  %v132_v21 = vld [vmem:[#allocation4 + $0xd8] sm:$0xff]  ;;  %v75_v23 = vperm.slane %v842_v48, 4 }
  0x39   :  { %v283_v28 = vld [vmem:[#allocation4 + $0x590] sm:$0xff]  ;;  %487 = vmatpush.msrb.mxu2 %v315_v25  ;;  %506 = vmatpush.msrb.mxu3 %v349_v26  ;;  %v281_v32 = vld [vmem:[#allocation4 + $0x580] sm:$0xff]  ;;  %v166_v22 = vld [vmem:[#allocation4 + $0x1e8] sm:$0xff]  ;;  %v78_v26 = vperm.slane %v842_v48, 7 }
  0x3a   :  { %v347_v30 = vld [vmem:[#allocation4 + $0x790] sm:$0xff]  ;;  %448 = vmatpush.msrb.mxu0 %v249_v27  ;;  %467 = vmatpush.msrb.mxu1 %v283_v28  ;;  %v345_v34 = vld [vmem:[#allocation4 + $0x780] sm:$0xff]  ;;  %v196_v24 = vld [vmem:[#allocation4 + $0x2d8] sm:$0xff]  ;;  %vm892_vm5 = vcmp.eq.s32.totalorder %v844_v55, %v75_v23 }
  0x3b   :  { %v247_v31 = vld [vmem:[#allocation4 + $0x470] sm:$0xff]  ;;  %488 = vmatpush.msrb.mxu2 %v313_v29  ;;  %507 = vmatpush.msrb.mxu3 %v347_v30  ;;  %v245_v35 = vld [vmem:[#allocation4 + $0x460] sm:$0xff]  ;;  %v230_v25 = vld [vmem:[#allocation4 + $0x3e8] sm:$0xff]  ;;  %vm900_vm6 = vcmp.eq.s32.totalorder %v844_v55, %v78_v26 }
  0x3c   :  { %v311_v33 = vld [vmem:[#allocation4 + $0x670] sm:$0xff]  ;;  %449 = vmatpush.msrb.mxu0 %v247_v31  ;;  %468 = vmatpush.msrb.mxu1 %v281_v32  ;;  %v309_v37 = vld [vmem:[#allocation4 + $0x660] sm:$0xff]  ;;  %v130_v28 = vld [vmem:[#allocation4 + $0xc8] sm:$0xff]  ;;  %v76_v31 = vperm.slane %v842_v48, 5  ;;  %v727_v10 = vsel %vm900_vm6, 1.0, %v806_v2 }
  0x3d   :  { %v279_v36 = vld [vmem:[#allocation4 + $0x570] sm:$0xff]  ;;  %489 = vmatpush.msrb.mxu2 %v311_v33  ;;  %508 = vmatpush.msrb.mxu3 %v345_v34  ;;  %v277_v40 = vld [vmem:[#allocation4 + $0x560] sm:$0xff]  ;;  %v164_v29 = vld [vmem:[#allocation4 + $0x1d8] sm:$0xff] }
  0x3e   :  { %v343_v38 = vld [vmem:[#allocation4 + $0x770] sm:$0xff]  ;;  %450 = vmatpush.msrb.mxu0 %v245_v35  ;;  %469 = vmatpush.msrb.mxu1 %v279_v36  ;;  %v341_v42 = vld [vmem:[#allocation4 + $0x760] sm:$0xff]  ;;  %v194_v30 = vld [vmem:[#allocation4 + $0x2c8] sm:$0xff]  ;;  %vm908_vm7 = vcmp.eq.s32.totalorder %v844_v55, %v76_v31 }
  0x3f   :  { %v243_v39 = vld [vmem:[#allocation4 + $0x450] sm:$0xff]  ;;  %490 = vmatpush.msrb.mxu2 %v309_v37  ;;  %509 = vmatpush.msrb.mxu3 %v343_v38  ;;  %v241_v43 = vld [vmem:[#allocation4 + $0x440] sm:$0xff]  ;;  %v228_v32 = vld [vmem:[#allocation4 + $0x3d8] sm:$0xff] }
  0x40   :  { %v307_v41 = vld [vmem:[#allocation4 + $0x650] sm:$0xff]  ;;  %451 = vmatpush.msrb.mxu0 %v243_v39  ;;  %470 = vmatpush.msrb.mxu1 %v277_v40  ;;  %v305_v46 = vld [vmem:[#allocation4 + $0x640] sm:$0xff]  ;;  %v128_v35 = vld [vmem:[#allocation4 + $0xb8] sm:$0xff] }
  0x41   :  { %v275_v44 = vld [vmem:[#allocation4 + $0x550] sm:$0xff]  ;;  %491 = vmatpush.msrb.mxu2 %v307_v41  ;;  %510 = vmatpush.msrb.mxu3 %v341_v42  ;;  %v273_v50 = vld [vmem:[#allocation4 + $0x540] sm:$0xff]  ;;  %v162_v36 = vld [vmem:[#allocation4 + $0x1c8] sm:$0xff] }
  0x42   :  { %v339_v47 = vld [vmem:[#allocation4 + $0x750] sm:$0xff]  ;;  %452 = vmatpush.msrb.mxu0 %v241_v43  ;;  %471 = vmatpush.msrb.mxu1 %v275_v44  ;;  %v337_v52 = vld [vmem:[#allocation4 + $0x740] sm:$0xff]  ;;  %v192_v37 = vld [vmem:[#allocation4 + $0x2b8] sm:$0xff] }
  0x43   :  { %v239_v49 = vld [vmem:[#allocation4 + $0x430] sm:$0xff]  ;;  %492 = vmatpush.msrb.mxu2 %v305_v46  ;;  %511 = vmatpush.msrb.mxu3 %v339_v47  ;;  %v237_v53 = vld [vmem:[#allocation4 + $0x420] sm:$0xff]  ;;  %v226_v38 = vld [vmem:[#allocation4 + $0x3c8] sm:$0xff] }
  0x44   :  { %v303_v51 = vld [vmem:[#allocation4 + $0x630] sm:$0xff]  ;;  %453 = vmatpush.msrb.mxu0 %v239_v49  ;;  %472 = vmatpush.msrb.mxu1 %v273_v50  ;;  %v301_v57 = vld [vmem:[#allocation4 + $0x620] sm:$0xff]  ;;  %v126_v40 = vld [vmem:[#allocation4 + $0xa8] sm:$0xff] }
  0x45   :  { %v271_v54 = vld [vmem:[#allocation4 + $0x530] sm:$0xff]  ;;  %493 = vmatpush.msrb.mxu2 %v303_v51  ;;  %512 = vmatpush.msrb.mxu3 %v337_v52  ;;  %v269_v60 = vld [vmem:[#allocation4 + $0x520] sm:$0xff]  ;;  %v160_v41 = vld [vmem:[#allocation4 + $0x1b8] sm:$0xff] }
  0x46   :  { %v335_v58 = vld [vmem:[#allocation4 + $0x730] sm:$0xff]  ;;  %454 = vmatpush.msrb.mxu0 %v237_v53  ;;  %473 = vmatpush.msrb.mxu1 %v271_v54  ;;  %v333_v63 = vld [vmem:[#allocation4 + $0x720] sm:$0xff]  ;;  %v190_v42 = vld [vmem:[#allocation4 + $0x2a8] sm:$0xff] }
  0x47   :  { %v235_v59 = vld [vmem:[#allocation4 + $0x410] sm:$0xff]  ;;  %494 = vmatpush.msrb.mxu2 %v301_v57  ;;  %513 = vmatpush.msrb.mxu3 %v335_v58  ;;  %v233_v3 = vld [vmem:[#allocation4 + $0x400] sm:$0xff]  ;;  %v224_v43 = vld [vmem:[#allocation4 + $0x3b8] sm:$0xff] }
  0x48   :  { %v299_v62 = vld [vmem:[#allocation4 + $0x610] sm:$0xff]  ;;  %455 = vmatpush.msrb.mxu0 %v235_v59  ;;  %474 = vmatpush.msrb.mxu1 %v269_v60  ;;  %v297_v5 = vld [vmem:[#allocation4 + $0x600] sm:$0xff]  ;;  %v124_v44 = vld [vmem:[#allocation4 + $0x98] sm:$0xff] }
  0x49   :  { %v267_v4 = vld [vmem:[#allocation4 + $0x510] sm:$0xff]  ;;  %495 = vmatpush.msrb.mxu2 %v299_v62  ;;  %514 = vmatpush.msrb.mxu3 %v333_v63  ;;  %v265_v13 = vld [vmem:[#allocation4 + $0x500] sm:$0xff]  ;;  %v188_v46 = vld [vmem:[#allocation4 + $0x298] sm:$0xff] }
  0x4a   :  { %v331_v7 = vld [vmem:[#allocation4 + $0x710] sm:$0xff]  ;;  %730 = vmatmul.msk.f32.vlgmr.msra.gmra.mxu2 %vm850_vm0, %v807_v9  ;;  %456 = vmatpush.msrb.mxu0 %v233_v3  ;;  %v329_v14 = vld [vmem:[#allocation4 + $0x700] sm:$0xff]  ;;  %v222_v47 = vld [vmem:[#allocation4 + $0x3a8] sm:$0xff] }
  0x4b   :  { %475 = vmatpush.msrb.mxu1 %v267_v4  ;;  %496 = vmatpush.msrb.mxu2 %v297_v5  ;;  %v122_v48 = vld [vmem:[#allocation4 + $0x88] sm:$0xff]  ;;  %v156_v49 = vld [vmem:[#allocation4 + $0x198] sm:$0xff]  ;;  %v103_v39 = vld [vmem:[%s998_s2] sm:$0x1f] }
  0x4c   :  { %515 = vmatpush.msrb.mxu3 %v331_v7  ;;  %728 = vmatmul.msk.f32.vlgmr.msra.gmra.mxu0 %vm856_vm1, %v807_v9  ;;  %v186_v50 = vld [vmem:[#allocation4 + $0x288] sm:$0xff]  ;;  %v220_v51 = vld [vmem:[#allocation4 + $0x398] sm:$0xff] }
  0x4d   :  { %731 = vmatmul.msk.f32.vlgmr.msra.gmra.mxu3 %vm864_vm2, %v807_v9  ;;  %521 = vmatpush.msra.mxu0 %v136_v11  ;;  %v120_v52 = vld [vmem:[#allocation4 + $0x78] sm:$0xff]  ;;  %v154_v53 = vld [vmem:[#allocation4 + $0x188] sm:$0xff] }
  0x4e   :  { %561 = vmatpush.msra.mxu2 %v200_v12  ;;  %476 = vmatpush.msrb.mxu1 %v265_v13  ;;  %v184_v54 = vld [vmem:[#allocation4 + $0x278] sm:$0xff]  ;;  %v218_v55 = vld [vmem:[#allocation4 + $0x388] sm:$0xff] }
  0x4f   :  { %516 = vmatpush.msrb.mxu3 %v329_v14  ;;  %729 = vmatmul.msk.f32.vlgmr.msra.gmra.mxu1 %vm872_vm3, %v807_v9  ;;  %v152_v57 = vld [vmem:[#allocation4 + $0x178] sm:$0xff]  ;;  %v182_v58 = vld [vmem:[#allocation4 + $0x268] sm:$0xff] }
  0x50   :  { %522 = vmatpush.msra.mxu0 %v134_v16  ;;  %541 = vmatpush.msra.mxu1 %v168_v17  ;;  %v216_v59 = vld [vmem:[#allocation4 + $0x378] sm:$0xff]  ;;  %v214_v63 = vld [vmem:[#allocation4 + $0x368] sm:$0xff] }
  0x51   :  { %562 = vmatpush.msra.mxu2 %v198_v19  ;;  %581 = vmatpush.msra.mxu3 %v232_v20  ;;  %v116_v60 = vld [vmem:[#allocation4 + $0x58] sm:$0xff]  ;;  %v178_v4 = vld [vmem:[#allocation4 + $0x248] sm:$0xff] }
  0x52   :  { %523 = vmatpush.msra.mxu0 %v132_v21  ;;  %542 = vmatpush.msra.mxu1 %v166_v22  ;;  %v180_v62 = vld [vmem:[#allocation4 + $0x258] sm:$0xff]  ;;  %v146_v7 = vld [vmem:[#allocation4 + $0x148] sm:$0xff] }
  0x53   :  { %563 = vmatpush.msra.mxu2 %v196_v24  ;;  %582 = vmatpush.msra.mxu3 %v230_v25  ;;  %v148_v3 = vld [vmem:[#allocation4 + $0x158] sm:$0xff]  ;;  %v210_v12 = vld [vmem:[#allocation4 + $0x348] sm:$0xff] }
  0x54   :  { %734 = vmatmul.msk.f32.vlgmr.msrb.gmra.mxu2 %vm886_vm4, %v807_v9  ;;  %524 = vmatpush.msra.mxu0 %v130_v28  ;;  %v212_v5 = vld [vmem:[#allocation4 + $0x358] sm:$0xff]  ;;  %v110_v13 = vld [vmem:[#allocation4 + $0x28] sm:$0xff] }
  0x55   :  { %543 = vmatpush.msra.mxu1 %v164_v29  ;;  %564 = vmatpush.msra.mxu2 %v194_v30  ;;  %v176_v11 = vld [vmem:[#allocation4 + $0x238] sm:$0xff]  ;;  %v174_v16 = vld [vmem:[#allocation4 + $0x228] sm:$0xff] }
  0x56   :  { %583 = vmatpush.msra.mxu3 %v228_v32  ;;  %732 = vmatmul.msk.f32.vlgmr.msrb.gmra.mxu0 %vm892_vm5, %v807_v9  ;;  %v144_v14 = vld [vmem:[#allocation4 + $0x138] sm:$0xff]  ;;  %v142_v19 = vld [vmem:[#allocation4 + $0x128] sm:$0xff] }
  0x57   :  { %735 = vmatmul.msk.f32.vlgmr.msrb.gmra.mxu3 %vm900_vm6, %v807_v9  ;;  %525 = vmatpush.msra.mxu0 %v128_v35  ;;  %v208_v17 = vld [vmem:[#allocation4 + $0x338] sm:$0xff]  ;;  %v206_v21 = vld [vmem:[#allocation4 + $0x328] sm:$0xff] }
  0x58   :  { %544 = vmatpush.msra.mxu1 %v162_v36  ;;  %565 = vmatpush.msra.mxu2 %v192_v37  ;;  %v108_v18 = vld [vmem:[#allocation4 + $0x18] sm:$0xff]  ;;  %v106_v22 = vld [vmem:[#allocation4 + $0x8] sm:$0xff] }
  0x59   :  { %584 = vmatpush.msra.mxu3 %v226_v38  ;;  %733 = vmatmul.msk.f32.vlgmr.msrb.gmra.mxu1 %vm908_vm7, %v807_v9  ;;  %v172_v20 = vld [vmem:[#allocation4 + $0x218] sm:$0xff]  ;;  %v170_v24 = vld [vmem:[#allocation4 + $0x208] sm:$0xff] }
  0x5a   :  { %526 = vmatpush.msra.mxu0 %v126_v40  ;;  %545 = vmatpush.msra.mxu1 %v160_v41  ;;  %v140_v23 = vld [vmem:[#allocation4 + $0x118] sm:$0xff]  ;;  %v138_v29 = vld [vmem:[#allocation4 + $0x108] sm:$0xff] }
  0x5b   :  { %566 = vmatpush.msra.mxu2 %v190_v42  ;;  %585 = vmatpush.msra.mxu3 %v224_v43  ;;  %v204_v25 = vld [vmem:[#allocation4 + $0x318] sm:$0xff]  ;;  %v202_v30 = vld [vmem:[#allocation4 + $0x308] sm:$0xff]  ;;  %v720_v42 = vsel %vm856_vm1, 1.0, %v806_v2  ;;  %v721_v43 = vsel %vm872_vm3, 1.0, %v806_v2 }
  0x5c   :  { %527 = vmatpush.msra.mxu0 %v124_v44  ;;  %546 = vmatpush.msra.mxu1 %v158_v45  ;;  %v264_v26 = vld [vmem:[#allocation4 + $0x4f8] sm:$0xff]  ;;  %v262_v31 = vld [vmem:[#allocation4 + $0x4e8] sm:$0xff] }
  0x5d   :  { %567 = vmatpush.msra.mxu2 %v188_v46  ;;  %586 = vmatpush.msra.mxu3 %v222_v47  ;;  %v328_v28 = vld [vmem:[#allocation4 + $0x6f8] sm:$0xff]  ;;  %v326_v35 = vld [vmem:[#allocation4 + $0x6e8] sm:$0xff] }
  0x5e   :  { %528 = vmatpush.msra.mxu0 %v122_v48  ;;  %547 = vmatpush.msra.mxu1 %v156_v49  ;;  %v296_v32 = vld [vmem:[#allocation4 + $0x5f8] sm:$0xff]  ;;  %v294_v38 = vld [vmem:[#allocation4 + $0x5e8] sm:$0xff] }
  0x5f   :  { %568 = vmatpush.msra.mxu2 %v186_v50  ;;  %587 = vmatpush.msra.mxu3 %v220_v51  ;;  %v360_v36 = vld [vmem:[#allocation4 + $0x7f8] sm:$0xff]  ;;  %v358_v41 = vld [vmem:[#allocation4 + $0x7e8] sm:$0xff]  ;;  %v690_v50 = vsel %vm689_vm8, %v720_v42, 0.0  ;;  %v691_v51 = vsel %vm689_vm8, %v721_v43, 0.0  ;;  %v726_v43 = vsel %vm886_vm4, 1.0, %v806_v2 }
  0x60   :  { %529 = vmatpush.msra.mxu0 %v120_v52  ;;  %548 = vmatpush.msra.mxu1 %v154_v53  ;;  %v260_v37 = vld [vmem:[#allocation4 + $0x4d8] sm:$0xff]  ;;  %v258_v44 = vld [vmem:[#allocation4 + $0x4c8] sm:$0xff] }
  0x61   :  { %569 = vmatpush.msra.mxu2 %v184_v54  ;;  %588 = vmatpush.msra.mxu3 %v218_v55  ;;  %v324_v40 = vld [vmem:[#allocation4 + $0x6d8] sm:$0xff]  ;;  %v322_v46 = vld [vmem:[#allocation4 + $0x6c8] sm:$0xff]  ;;  %v722_v54 = vsel %vm850_vm0, 1.0, %v806_v2 }
  0x62   :  { %530 = vmatpush.msra.mxu0 %v118_v56  ;;  %549 = vmatpush.msra.mxu1 %v152_v57  ;;  %v292_v45 = vld [vmem:[#allocation4 + $0x5d8] sm:$0xff]  ;;  %v290_v49 = vld [vmem:[#allocation4 + $0x5c8] sm:$0xff] }
  0x63   :  { %570 = vmatpush.msra.mxu2 %v182_v58  ;;  %589 = vmatpush.msra.mxu3 %v216_v59  ;;  %v356_v47 = vld [vmem:[#allocation4 + $0x7d8] sm:$0xff]  ;;  %v354_v53 = vld [vmem:[#allocation4 + $0x7c8] sm:$0xff]  ;;  %v692_v59 = vadd.f32 %v691_v51, %v690_v50 }
  0x64   :  { %531 = vmatpush.msra.mxu0 %v116_v60  ;;  %550 = vmatpush.msra.mxu1 %v150_v61  ;;  %v256_v48 = vld [vmem:[#allocation4 + $0x4b8] sm:$0xff]  ;;  %v254_v55 = vld [vmem:[#allocation4 + $0x4a8] sm:$0xff] }
  0x65   :  { %571 = vmatpush.msra.mxu2 %v180_v62  ;;  %590 = vmatpush.msra.mxu3 %v214_v63  ;;  %v320_v52 = vld [vmem:[#allocation4 + $0x6b8] sm:$0xff]  ;;  %v318_v57 = vld [vmem:[#allocation4 + $0x6a8] sm:$0xff]  ;;  %v693_v62 = vsel %vm689_vm8, %v722_v54, 0.0 }
  0x66   :  { %532 = vmatpush.msra.mxu0 %v114_v0  ;;  %551 = vmatpush.msra.mxu1 %v148_v3  ;;  %v288_v56 = vld [vmem:[#allocation4 + $0x5b8] sm:$0xff]  ;;  %v286_v61 = vld [vmem:[#allocation4 + $0x5a8] sm:$0xff]  ;;  %v723_v3 = vsel %vm864_vm2, 1.0, %v806_v2 }
  0x67   :  { %572 = vmatpush.msra.mxu2 %v178_v4  ;;  %591 = vmatpush.msra.mxu3 %v212_v5  ;;  %v352_v58 = vld [vmem:[#allocation4 + $0x7b8] sm:$0xff]  ;;  %v350_v0 = vld [vmem:[#allocation4 + $0x7a8] sm:$0xff] }
  0x68   :  { %533 = vmatpush.msra.mxu0 %v112_v6  ;;  %552 = vmatpush.msra.mxu1 %v146_v7  ;;  %v252_v60 = vld [vmem:[#allocation4 + $0x498] sm:$0xff]  ;;  %v250_v4 = vld [vmem:[#allocation4 + $0x488] sm:$0xff] }
  0x69   :  { %573 = vmatpush.msra.mxu2 %v176_v11  ;;  %592 = vmatpush.msra.mxu3 %v210_v12  ;;  %v316_v63 = vld [vmem:[#allocation4 + $0x698] sm:$0xff]  ;;  %v314_v6 = vld [vmem:[#allocation4 + $0x688] sm:$0xff]  ;;  %v694_v11 = vadd.f32 %v693_v62, %v692_v59 }
  0x6a   :  { %534 = vmatpush.msra.mxu0 %v110_v13  ;;  %553 = vmatpush.msra.mxu1 %v144_v14  ;;  %v284_v5 = vld [vmem:[#allocation4 + $0x598] sm:$0xff]  ;;  %v282_v13 = vld [vmem:[#allocation4 + $0x588] sm:$0xff]  ;;  %v695_v14 = vsel %vm689_vm8, %v723_v3, 0.0 }
  0x6b   :  { %574 = vmatpush.msra.mxu2 %v174_v16  ;;  %593 = vmatpush.msra.mxu3 %v208_v17  ;;  %v348_v7 = vld [vmem:[#allocation4 + $0x798] sm:$0xff]  ;;  %v346_v17 = vld [vmem:[#allocation4 + $0x788] sm:$0xff] }
  0x6c   :  { %535 = vmatpush.msra.mxu0 %v108_v18  ;;  %554 = vmatpush.msra.mxu1 %v142_v19  ;;  %v248_v12 = vld [vmem:[#allocation4 + $0x478] sm:$0xff]  ;;  %v724_v18 = vsel %vm892_vm5, 1.0, %v806_v2  ;;  %v246_v19 = vld [vmem:[#allocation4 + $0x468] sm:$0xff] }
  0x6d   :  { %575 = vmatpush.msra.mxu2 %v172_v20  ;;  %594 = vmatpush.msra.mxu3 %v206_v21  ;;  %v312_v16 = vld [vmem:[#allocation4 + $0x678] sm:$0xff]  ;;  %v310_v21 = vld [vmem:[#allocation4 + $0x668] sm:$0xff] }
  0x6e   :  { %536 = vmatpush.msra.mxu0 %v106_v22  ;;  %555 = vmatpush.msra.mxu1 %v140_v23  ;;  %v280_v20 = vld [vmem:[#allocation4 + $0x578] sm:$0xff]  ;;  %v270_v50 = vld [vmem:[#allocation4 + $0x528] sm:$0xff] }
  0x6f   :  { %576 = vmatpush.msra.mxu2 %v170_v24  ;;  %595 = vmatpush.msra.mxu3 %v204_v25  ;;  %v344_v22 = vld [vmem:[#allocation4 + $0x778] sm:$0xff]  ;;  %v278_v24 = vld [vmem:[#allocation4 + $0x568] sm:$0xff]  ;;  %v696_v25 = vadd.f32 %v695_v14, %v694_v11 }
  0x70   :  { %601 = vmatpush.msrb.mxu0 %v264_v26  ;;  %556 = vmatpush.msra.mxu1 %v138_v29  ;;  %v244_v23 = vld [vmem:[#allocation4 + $0x458] sm:$0xff]  ;;  %v697_v26 = vsel %vm689_vm8, %v724_v18, 0.0  ;;  %v342_v29 = vld [vmem:[#allocation4 + $0x768] sm:$0xff] }
  0x71   :  { %641 = vmatpush.msrb.mxu2 %v328_v28  ;;  %596 = vmatpush.msra.mxu3 %v202_v30  ;;  %v308_v28 = vld [vmem:[#allocation4 + $0x658] sm:$0xff]  ;;  %v725_v30 = vsel %vm908_vm7, 1.0, %v806_v2  ;;  %v330_v59 = vld [vmem:[#allocation4 + $0x708] sm:$0xff] }
  0x72   :  { %602 = vmatpush.msrb.mxu0 %v262_v31  ;;  %621 = vmatpush.msrb.mxu1 %v296_v32  ;;  %v242_v31 = vld [vmem:[#allocation4 + $0x448] sm:$0xff]  ;;  %v276_v32 = vld [vmem:[#allocation4 + $0x558] sm:$0xff] }
  0x73   :  { %642 = vmatpush.msrb.mxu2 %v326_v35  ;;  %661 = vmatpush.msrb.mxu3 %v360_v36  ;;  %v306_v35 = vld [vmem:[#allocation4 + $0x648] sm:$0xff]  ;;  %v340_v36 = vld [vmem:[#allocation4 + $0x758] sm:$0xff] }
  0x74   :  { %603 = vmatpush.msrb.mxu0 %v260_v37  ;;  %622 = vmatpush.msrb.mxu1 %v294_v38  ;;  %v698_v37 = vadd.f32 %v697_v26, %v696_v25  ;;  %v240_v38 = vld [vmem:[#allocation4 + $0x438] sm:$0xff] }
  0x75   :  { %643 = vmatpush.msrb.mxu2 %v324_v40  ;;  %662 = vmatpush.msrb.mxu3 %v358_v41  ;;  %v699_v40 = vsel %vm689_vm8, %v725_v30, 0.0  ;;  %v274_v41 = vld [vmem:[#allocation4 + $0x548] sm:$0xff]  ;;  %v304_v42 = vld [vmem:[#allocation4 + $0x638] sm:$0xff] }
  0x76   :  { %604 = vmatpush.msrb.mxu0 %v258_v44  ;;  %623 = vmatpush.msrb.mxu1 %v292_v45  ;;  %v338_v44 = vld [vmem:[#allocation4 + $0x748] sm:$0xff]  ;;  %v272_v45 = vld [vmem:[#allocation4 + $0x538] sm:$0xff] }
  0x77   :  { %644 = vmatpush.msrb.mxu2 %v322_v46  ;;  %663 = vmatpush.msrb.mxu3 %v356_v47  ;;  %v700_v46 = vadd.f32 %v699_v40, %v698_v37  ;;  %v302_v47 = vld [vmem:[#allocation4 + $0x628] sm:$0xff]  ;;  %v300_v51 = vld [vmem:[#allocation4 + $0x618] sm:$0xff] }
  0x78   :  { %605 = vmatpush.msrb.mxu0 %v256_v48  ;;  %624 = vmatpush.msrb.mxu1 %v290_v49  ;;  %v336_v48 = vld [vmem:[#allocation4 + $0x738] sm:$0xff]  ;;  %v701_v49 = vsel %vm689_vm8, %v726_v43, 0.0 }
  0x79   :  { %645 = vmatpush.msrb.mxu2 %v320_v52  ;;  %664 = vmatpush.msrb.mxu3 %v354_v53  ;;  %v334_v52 = vld [vmem:[#allocation4 + $0x728] sm:$0xff]  ;;  %v268_v54 = vld [vmem:[#allocation4 + $0x518] sm:$0xff] }
  0x7a   :  { %606 = vmatpush.msrb.mxu0 %v254_v55  ;;  %625 = vmatpush.msrb.mxu1 %v288_v56  ;;  %v234_v53 = vld [vmem:[#allocation4 + $0x408] sm:$0xff]  ;;  %v702_v55 = vadd.f32 %v701_v49, %v700_v46  ;;  %v332_v15 = vld [vmem:[#allocation4 + $0x718] sm:$0xff] }
  0x7b   :  { %646 = vmatpush.msrb.mxu2 %v318_v57  ;;  %665 = vmatpush.msrb.mxu3 %v352_v58  ;;  %v298_v56 = vld [vmem:[#allocation4 + $0x608] sm:$0xff]  ;;  %v703_v57 = vsel %vm689_vm8, %v727_v10, 0.0 }
  0x7c   :  { %607 = vmatpush.msrb.mxu0 %v252_v60  ;;  %626 = vmatpush.msrb.mxu1 %v286_v61  ;;  %v266_v58 = vld [vmem:[#allocation4 + $0x508] sm:$0xff]  ;;  %v704_v60 = vadd.f32 %v703_v57, %v702_v55 }
  0x7d   :  { %647 = vmatpush.msrb.mxu2 %v316_v63  ;;  %666 = vmatpush.msrb.mxu3 %v350_v0 }
  0x7e   :  { %608 = vmatpush.msrb.mxu0 %v250_v4  ;;  %627 = vmatpush.msrb.mxu1 %v284_v5 }
  0x7f   :  { %648 = vmatpush.msrb.mxu2 %v314_v6  ;;  %667 = vmatpush.msrb.mxu3 %v348_v7 }
  0x80   :  { %609 = vmatpush.msrb.mxu0 %v248_v12  ;;  %628 = vmatpush.msrb.mxu1 %v282_v13 }
  0x81   :  { %649 = vmatpush.msrb.mxu2 %v312_v16  ;;  %668 = vmatpush.msrb.mxu3 %v346_v17  ;;  %v688_v16 = vld [vmem:[%s999_s3] sm:$0x1f] }
  0x82   :  { %610 = vmatpush.msrb.mxu0 %v246_v19  ;;  %629 = vmatpush.msrb.mxu1 %v280_v20 }
  0x83   :  { %650 = vmatpush.msrb.mxu2 %v310_v21  ;;  %669 = vmatpush.msrb.mxu3 %v344_v22 }
  0x84   :  { %611 = vmatpush.msrb.mxu0 %v244_v23  ;;  %630 = vmatpush.msrb.mxu1 %v278_v24 }
  0x85   :  { %651 = vmatpush.msrb.mxu2 %v308_v28  ;;  %670 = vmatpush.msrb.mxu3 %v342_v29 }
  0x86   :  { %738 = vmatmul.msk.f32.vlgmr.msra.gmra.mxu2 %vm850_vm0, %v807_v9  ;;  %612 = vmatpush.msrb.mxu0 %v242_v31  ;;  %v104_v31 = vld [vmem:[%s998_s2 + $0x8] sm:$0x1f] }
  0x87   :  { %631 = vmatpush.msrb.mxu1 %v276_v32  ;;  %652 = vmatpush.msrb.mxu2 %v306_v35 }
  0x88   :  { %671 = vmatpush.msrb.mxu3 %v340_v36  ;;  %736 = vmatmul.msk.f32.vlgmr.msra.gmra.mxu0 %vm856_vm1, %v807_v9 }
  0x89   :  { %739 = vmatmul.msk.f32.vlgmr.msra.gmra.mxu3 %vm864_vm2, %v807_v9  ;;  %613 = vmatpush.msrb.mxu0 %v240_v38 }
  0x8a   :  { %632 = vmatpush.msrb.mxu1 %v274_v41  ;;  %653 = vmatpush.msrb.mxu2 %v304_v42 }
  0x8b   :  { %672 = vmatpush.msrb.mxu3 %v338_v44  ;;  %737 = vmatmul.msk.f32.vlgmr.msra.gmra.mxu1 %vm872_vm3, %v807_v9 }
  0x8c   :  { %614 = vmatpush.msrb.mxu0 %v238_v1  ;;  %633 = vmatpush.msrb.mxu1 %v272_v45 }
  0x8d   :  { %654 = vmatpush.msrb.mxu2 %v302_v47  ;;  %673 = vmatpush.msrb.mxu3 %v336_v48 }
  0x8e   :  { %615 = vmatpush.msrb.mxu0 %v236_v8  ;;  %634 = vmatpush.msrb.mxu1 %v270_v50 }
  0x8f   :  { %655 = vmatpush.msrb.mxu2 %v300_v51  ;;  %674 = vmatpush.msrb.mxu3 %v334_v52 }
  0x90   :  { %616 = vmatpush.msrb.mxu0 %v234_v53  ;;  %635 = vmatpush.msrb.mxu1 %v268_v54 }
  0x91   :  { %656 = vmatpush.msrb.mxu2 %v298_v56  ;;  %675 = vmatpush.msrb.mxu3 %v332_v15 }
  0x92   :  { %740 = vmatmul.msk.f32.vlgmr.msrb.gmra.mxu0 %vm892_vm5, %v807_v9  ;;  %742 = vmatmul.msk.f32.vlgmr.msrb.gmra.mxu2 %vm886_vm4, %v807_v9 }
  0x93   :  { %636 = vmatpush.msrb.mxu1 %v266_v58  ;;  %676 = vmatpush.msrb.mxu3 %v330_v59 }
  0x94   :  { %741 = vmatmul.msk.f32.vlgmr.msrb.gmra.mxu1 %vm908_vm7, %v807_v9  ;;  %743 = vmatmul.msk.f32.vlgmr.msrb.gmra.mxu3 %vm900_vm6, %v807_v9 }
  0x95   :  { %705 = vadd.xlane.f32.xlu0 %v704_v60 }
  0xc9   :  { %v378_v61 = vpop.f32.mrf.mxu0 }
  0xcc   :  { %v398_v62 = vpop.f32.mrf.mxu1 }
  0xcd   :  { %v399_v63 = vadd.f32 %v398_v62, %v378_v61  ;;  %v418_v33 = vpop.f32.mrf.mxu2 }
  0xcf   :  { %v419_v0 = vadd.f32 %v418_v33, %v399_v63 }
  0xd0   :  { %v438_v3 = vpop.f32.mrf.mxu3 }
  0xd1   :  { %v439_v4 = vadd.f32 %v438_v3, %v419_v0 }
  0xd3   :  { %v458_v27 = vpop.f32.mrf.mxu0 }
  0xd4   :  { %v459_v5 = vadd.f32 %v458_v27, %v439_v4 }
  0xd6   :  { %v478_v6 = vpop.f32.mrf.mxu1 }
  0xd7   :  { %v479_v7 = vadd.f32 %v478_v6, %v459_v5  ;;  %v498_v11 = vpop.f32.mrf.mxu2 }
  0xd9   :  { %v499_v12 = vadd.f32 %v498_v11, %v479_v7 }
  0xda   :  { %v518_v34 = vpop.f32.mrf.mxu3 }
  0xdb   :  { %v519_v9 = vadd.f32 %v518_v34, %v499_v12 }
  0xdd   :  { %v681_v13 = vadd.f32 %v519_v9, %v103_v39 }
  0xdf   :  { %683 = vst [vmem:[%s998_s2] sm:$0x1f] %v681_v13 }
 0x105   :  { %v538_v14 = vpop.f32.mrf.mxu0 }
 0x108   :  { %v558_v17 = vpop.f32.mrf.mxu1  ;;  %v706_v18 = vpop.xlane.xlu0 %705 }
 0x109   :  { %v559_v19 = vadd.f32 %v558_v17, %v538_v14  ;;  %v578_v20 = vpop.f32.mrf.mxu2  ;;  %v707_v21 = vadd.f32 %v706_v18, %v688_v16 }
 0x10b   :  { %v579_v22 = vadd.f32 %v578_v20, %v559_v19  ;;  %709 = vst.msk [vmem:[%s999_s3] sm:$0x1f] %vm66_vm9, %v707_v21 }
 0x10c   :  { %v598_v23 = vpop.f32.mrf.mxu3 }
 0x10d   :  { %v599_v24 = vadd.f32 %v598_v23, %v579_v22 }
 0x10f   :  { %v618_v25 = vpop.f32.mrf.mxu0 }
 0x110   :  { %v619_v26 = vadd.f32 %v618_v25, %v599_v24 }
 0x111   :  { %v638_v2 = vpop.f32.mrf.mxu1 }
 0x112   :  { %v639_v28 = vadd.f32 %v638_v2, %v619_v26 }
 0x115   :  { %v658_v29 = vpop.f32.mrf.mxu2 }
 0x116   :  { %v659_v30 = vadd.f32 %v658_v29, %v639_v28 }
 0x117   :  { %v678_v32 = vpop.f32.mrf.mxu3 }
 0x118   :  { %v679_v35 = vadd.f32 %v678_v32, %v659_v30 }
 0x11a   :  { %v682_v36 = vadd.f32 %v679_v35, %v104_v31 }
 0x11c   :  { %684 = vst [vmem:[%s998_s2 + $0x8] sm:$0x1f] %v682_v36 }
 0x11d   :  { %718 = vsyncpa [#allocation3], 1 }
 0x11e   :  { %719 = vsyncpa [#allocation5], 1 }

</bundles_post_ra>
